<compile_context>
chip_gen: v6e
topology: v6e:2x2x1
jax: 0.10.0
libtpu: 0.0.40
codegen_flags: <defaults>
</compile_context>

<pallas_src>
import jax
import jax.numpy as jnp
from jax.experimental import pallas as pl
from jax.experimental.pallas import tpu as pltpu


IN_DIM = 28 * 28      # 784
HID = 64              # logical hidden width
HID_P = 128           # lane-dense padded hidden width
NCLS = 10             # logical class count
NCLS_P = 128          # lane-dense padded class count
NEG_BIG = -1e30       # "-inf" for padded class logits (finite: no NaN risk)
MAX_TILE_B = 2048     # max batch tile (per-step overhead < ~20% even on v7x)
MIN_SPLIT_B = 256     # below this, use a single tile sized to the batch


def mlp_kernel(x_ref, w1_ref, b1_ref, w2_ref, b2_ref,
               w3_ref, b3_ref, w4_ref, b4_ref, o_ref):
    # x tile arrives as f32 (tile_b, 784); cast to bf16 in-kernel (hidden
    # under the input DMA). Weights bf16, biases f32, all VMEM-resident.
    x = x_ref[...].astype(jnp.bfloat16)

    h = jnp.dot(x, w1_ref[...], preferred_element_type=jnp.float32) + b1_ref[...]
    h = jnp.maximum(h, 0.0)                                   # f32 (tile_b, 128)

    h = jnp.dot(h.astype(jnp.bfloat16), w2_ref[...],
                preferred_element_type=jnp.float32) + b2_ref[...]
    h = jnp.maximum(h, 0.0)

    h = jnp.dot(h.astype(jnp.bfloat16), w3_ref[...],
                preferred_element_type=jnp.float32) + b3_ref[...]
    h = jnp.maximum(h, 0.0)

    logits = jnp.dot(h.astype(jnp.bfloat16), w4_ref[...],
                     preferred_element_type=jnp.float32) + b4_ref[...]
    # Padded class columns carry bias -1e30 -> exp underflows to exactly 0,
    # so the 128-wide log_softmax equals the 10-wide one on the real columns.
    m = jnp.max(logits, axis=-1, keepdims=True)
    shifted = logits - m
    lse = jnp.log(jnp.sum(jnp.exp(shifted), axis=-1, keepdims=True))
    o_ref[...] = shifted - lse                                # f32 (tile_b, 128)


def _round_up(n, m):
    return ((n + m - 1) // m) * m


def _choose_tile(B, max_tile=MAX_TILE_B, min_split=MIN_SPLIT_B):
    """Adaptive batch tile.

    Small B: one tile sized to the batch (no wasted DMA / MXU work).
    Large B: tile <= max_tile with an even tile count so v7x's two
    TensorCores split the 'parallel' batch axis evenly (no-op on v5e/v6e).
    """
    if B <= min_split:
        return _round_up(max(B, 1), 16)
    n = max(2, pl.cdiv(B, max_tile))
    if n % 2:
        n += 1
    return _round_up(pl.cdiv(B, n), 16)


def _prepare_params(params):
    """Pad hidden width to 128, classes to 128; cast weights to bf16.

    Zero-padded hidden lanes stay exactly 0 through ReLU (0*w + 0 bias),
    so the math on the real 64 lanes / 10 classes is unchanged.
    """
    w1 = jnp.zeros((IN_DIM, HID_P), jnp.float32).at[:, :HID].set(params["w1"])
    b1 = jnp.zeros((1, HID_P), jnp.float32).at[:, :HID].set(params["b1"])
    w2 = jnp.zeros((HID_P, HID_P), jnp.float32).at[:HID, :HID].set(params["w2"])
    b2 = jnp.zeros((1, HID_P), jnp.float32).at[:, :HID].set(params["b2"])
    w3 = jnp.zeros((HID_P, HID_P), jnp.float32).at[:HID, :HID].set(params["w3"])
    b3 = jnp.zeros((1, HID_P), jnp.float32).at[:, :HID].set(params["b3"])
    w4 = jnp.zeros((HID_P, NCLS_P), jnp.float32).at[:HID, :NCLS].set(params["w4"])
    b4 = jnp.full((1, NCLS_P), NEG_BIG, jnp.float32).at[:, :NCLS].set(params["b4"])
    bf = jnp.bfloat16
    return (w1.astype(bf), b1, w2.astype(bf), b2,
            w3.astype(bf), b3, w4.astype(bf), b4)


def net_forward(x, params):
    """x: (B, 784) float32 -> (B, 10) float32 log-probs."""
    B = x.shape[0]
    w1, b1, w2, b2, w3, b3, w4, b4 = _prepare_params(params)

    tile_b = _choose_tile(B)
    n_tiles = pl.cdiv(B, tile_b)
    Bp = n_tiles * tile_b

    # Only pad the batch when needed (f32, no cast) — zero rows are finite
    # through the whole network and are sliced off afterwards.
    x_in = x if Bp == B else jnp.pad(x, ((0, Bp - B), (0, 0)))

    const2 = lambda i: (0, 0)
    weight_bytes = sum(int(w.size) * w.dtype.itemsize
                       for w in (w1, b1, w2, b2, w3, b3, w4, b4))
    cost = pl.CostEstimate(
        flops=2 * Bp * HID_P * (IN_DIM + HID_P + HID_P + HID_P),
        transcendentals=Bp * (NCLS_P + 1),
        bytes_accessed=Bp * IN_DIM * 4 + Bp * NCLS_P * 4 + weight_bytes,
    )

    out_padded = pl.pallas_call(
        mlp_kernel,
        out_shape=jax.ShapeDtypeStruct((Bp, NCLS_P), jnp.float32),
        grid_spec=pltpu.PrefetchScalarGridSpec(
            num_scalar_prefetch=0,
            grid=(n_tiles,),
            in_specs=[
                pl.BlockSpec((tile_b, IN_DIM), lambda i: (i, 0)),   # x: streamed f32
                pl.BlockSpec((IN_DIM, HID_P), const2),              # weights/biases:
                pl.BlockSpec((1, HID_P), const2),                   #   resident in VMEM
                pl.BlockSpec((HID_P, HID_P), const2),
                pl.BlockSpec((1, HID_P), const2),
                pl.BlockSpec((HID_P, HID_P), const2),
                pl.BlockSpec((1, HID_P), const2),
                pl.BlockSpec((HID_P, NCLS_P), const2),
                pl.BlockSpec((1, NCLS_P), const2),
            ],
            out_specs=pl.BlockSpec((tile_b, NCLS_P), lambda i: (i, 0)),
        ),
        compiler_params=pltpu.CompilerParams(
            dimension_semantics=("parallel",),
            vmem_limit_bytes=48 << 20,   # f32 x tiles @ 2048 rows, double-buffered
        ),
        cost_estimate=cost,
    )(x_in, w1, b1, w2, b2, w3, b3, w4, b4)

    return out_padded[:B, :NCLS]


def init_params(key):
    """PyTorch nn.Linear-style init; weights stored transposed as (in, out)."""
    dims = [(IN_DIM, HID), (HID, HID), (HID, HID), (HID, NCLS)]
    params = {}
    for i, (fan_in, fan_out) in enumerate(dims, start=1):
        key, kw, kb = jax.random.split(key, 3)
        bound = 1.0 / jnp.sqrt(fan_in)
        params[f"w{i}"] = jax.random.uniform(
            kw, (fan_in, fan_out), jnp.float32, -bound, bound)
        params[f"b{i}"] = jax.random.uniform(
            kb, (1, fan_out), jnp.float32, -bound, bound)
    return params


def reference_forward(x, params):
    """Plain-JAX reference using the same bf16-operand / f32-accumulate scheme."""
    bf = jnp.bfloat16
    h = x
    for i in range(1, 4):
        h = jnp.maximum(
            jnp.dot(h.astype(bf), params[f"w{i}"].astype(bf),
                    preferred_element_type=jnp.float32) + params[f"b{i}"], 0.0)
    logits = jnp.dot(h.astype(bf), params["w4"].astype(bf),
                     preferred_element_type=jnp.float32) + params["b4"]
    return jax.nn.log_softmax(logits, axis=1)


if __name__ == "__main__":
    key = jax.random.PRNGKey(0)
    kx, kp = jax.random.split(key)

    B = 8
    x = jax.random.normal(kx, (B, IN_DIM), dtype=jnp.float32)
    params = init_params(kp)

    out = net_forward(x, params)
    out = jax.block_until_ready(out)

    ref = reference_forward(x, params)
    assert out.shape == (B, NCLS)
    assert jnp.allclose(out, ref, atol=5e-3, rtol=5e-3), "mismatch vs reference"
    # log-probs must normalize
    assert jnp.allclose(jnp.sum(jnp.exp(out), axis=1), 1.0, atol=1e-3)

    print("KERNEL_OK")
</pallas_src>

<mosaic_0001>
module attributes {stable_mosaic.version = 11 : i64} {
  func.func @mlp_kernel(%arg0: i32, %arg1: memref<16x784xf32, #tpu.memory_space<vmem>>, %arg2: memref<784x128xbf16, #tpu.memory_space<vmem>>, %arg3: memref<1x128xf32, #tpu.memory_space<vmem>>, %arg4: memref<128x128xbf16, #tpu.memory_space<vmem>>, %arg5: memref<1x128xf32, #tpu.memory_space<vmem>>, %arg6: memref<128x128xbf16, #tpu.memory_space<vmem>>, %arg7: memref<1x128xf32, #tpu.memory_space<vmem>>, %arg8: memref<128x128xbf16, #tpu.memory_space<vmem>>, %arg9: memref<1x128xf32, #tpu.memory_space<vmem>>, %arg10: memref<16x128xf32, #tpu.memory_space<vmem>>) attributes {dimension_semantics = [#tpu.dimension_semantics<parallel>], iteration_bounds = array<i64: 1>, scalar_prefetch = 0 : i64, scratch_operands = 0 : i64, tpu.core_type = #tpu.core_type<tc>, window_params = [{transform_indices = @transform_0, window_bounds = array<i64: 16, 784>}, {pipeline_mode = #tpu.pipeline_mode<synchronous>, transform_indices = @transform_1, window_bounds = array<i64: 784, 128>}, {pipeline_mode = #tpu.pipeline_mode<synchronous>, transform_indices = @transform_2, window_bounds = array<i64: 1, 128>}, {pipeline_mode = #tpu.pipeline_mode<synchronous>, transform_indices = @transform_3, window_bounds = array<i64: 128, 128>}, {pipeline_mode = #tpu.pipeline_mode<synchronous>, transform_indices = @transform_4, window_bounds = array<i64: 1, 128>}, {pipeline_mode = #tpu.pipeline_mode<synchronous>, transform_indices = @transform_5, window_bounds = array<i64: 128, 128>}, {pipeline_mode = #tpu.pipeline_mode<synchronous>, transform_indices = @transform_6, window_bounds = array<i64: 1, 128>}, {pipeline_mode = #tpu.pipeline_mode<synchronous>, transform_indices = @transform_7, window_bounds = array<i64: 128, 128>}, {pipeline_mode = #tpu.pipeline_mode<synchronous>, transform_indices = @transform_8, window_bounds = array<i64: 1, 128>}, {transform_indices = @transform_9, window_bounds = array<i64: 16, 128>}]} {
    %c0 = arith.constant 0 : index
    %c0_0 = arith.constant 0 : index
    %0 = vector.load %arg1[%c0, %c0_0] : memref<16x784xf32, #tpu.memory_space<vmem>>, vector<16x784xf32>
    %1 = arith.truncf %0 : vector<16x784xf32> to vector<16x784xbf16>
    %c0_1 = arith.constant 0 : index
    %c0_2 = arith.constant 0 : index
    %2 = vector.load %arg2[%c0_1, %c0_2] : memref<784x128xbf16, #tpu.memory_space<vmem>>, vector<784x128xbf16>
    %cst = arith.constant dense<0.000000e+00> : vector<16x128xf32>
    %3 = tpu.matmul %1, %2, %cst {dimension_numbers = #tpu.dot_dimension_numbers<[1], [0], [0], [1], [0, 0, 1, 1], [], []>} : vector<16x784xbf16>, vector<784x128xbf16>, vector<16x128xf32> -> vector<16x128xf32>
    %c0_3 = arith.constant 0 : index
    %c0_4 = arith.constant 0 : index
    %4 = vector.load %arg3[%c0_3, %c0_4] : memref<1x128xf32, #tpu.memory_space<vmem>>, vector<1x128xf32>
    %5 = vector.broadcast %4 : vector<1x128xf32> to vector<16x128xf32>
    %6 = arith.addf %3, %5 : vector<16x128xf32>
    %cst_5 = arith.constant 0.000000e+00 : f32
    %7 = vector.broadcast %cst_5 : f32 to vector<16x128xf32>
    %8 = arith.maximumf %6, %7 : vector<16x128xf32>
    %9 = arith.truncf %8 : vector<16x128xf32> to vector<16x128xbf16>
    %c0_6 = arith.constant 0 : index
    %c0_7 = arith.constant 0 : index
    %10 = vector.load %arg4[%c0_6, %c0_7] : memref<128x128xbf16, #tpu.memory_space<vmem>>, vector<128x128xbf16>
    %cst_8 = arith.constant dense<0.000000e+00> : vector<16x128xf32>
    %11 = tpu.matmul %9, %10, %cst_8 {dimension_numbers = #tpu.dot_dimension_numbers<[1], [0], [0], [1], [0, 0, 1, 1], [], []>} : vector<16x128xbf16>, vector<128x128xbf16>, vector<16x128xf32> -> vector<16x128xf32>
    %c0_9 = arith.constant 0 : index
    %c0_10 = arith.constant 0 : index
    %12 = vector.load %arg5[%c0_9, %c0_10] : memref<1x128xf32, #tpu.memory_space<vmem>>, vector<1x128xf32>
    %13 = vector.broadcast %12 : vector<1x128xf32> to vector<16x128xf32>
    %14 = arith.addf %11, %13 : vector<16x128xf32>
    %cst_11 = arith.constant 0.000000e+00 : f32
    %15 = vector.broadcast %cst_11 : f32 to vector<16x128xf32>
    %16 = arith.maximumf %14, %15 : vector<16x128xf32>
    %17 = arith.truncf %16 : vector<16x128xf32> to vector<16x128xbf16>
    %c0_12 = arith.constant 0 : index
    %c0_13 = arith.constant 0 : index
    %18 = vector.load %arg6[%c0_12, %c0_13] : memref<128x128xbf16, #tpu.memory_space<vmem>>, vector<128x128xbf16>
    %cst_14 = arith.constant dense<0.000000e+00> : vector<16x128xf32>
    %19 = tpu.matmul %17, %18, %cst_14 {dimension_numbers = #tpu.dot_dimension_numbers<[1], [0], [0], [1], [0, 0, 1, 1], [], []>} : vector<16x128xbf16>, vector<128x128xbf16>, vector<16x128xf32> -> vector<16x128xf32>
    %c0_15 = arith.constant 0 : index
    %c0_16 = arith.constant 0 : index
    %20 = vector.load %arg7[%c0_15, %c0_16] : memref<1x128xf32, #tpu.memory_space<vmem>>, vector<1x128xf32>
    %21 = vector.broadcast %20 : vector<1x128xf32> to vector<16x128xf32>
    %22 = arith.addf %19, %21 : vector<16x128xf32>
    %cst_17 = arith.constant 0.000000e+00 : f32
    %23 = vector.broadcast %cst_17 : f32 to vector<16x128xf32>
    %24 = arith.maximumf %22, %23 : vector<16x128xf32>
    %25 = arith.truncf %24 : vector<16x128xf32> to vector<16x128xbf16>
    %c0_18 = arith.constant 0 : index
    %c0_19 = arith.constant 0 : index
    %26 = vector.load %arg8[%c0_18, %c0_19] : memref<128x128xbf16, #tpu.memory_space<vmem>>, vector<128x128xbf16>
    %cst_20 = arith.constant dense<0.000000e+00> : vector<16x128xf32>
    %27 = tpu.matmul %25, %26, %cst_20 {dimension_numbers = #tpu.dot_dimension_numbers<[1], [0], [0], [1], [0, 0, 1, 1], [], []>} : vector<16x128xbf16>, vector<128x128xbf16>, vector<16x128xf32> -> vector<16x128xf32>
    %c0_21 = arith.constant 0 : index
    %c0_22 = arith.constant 0 : index
    %28 = vector.load %arg9[%c0_21, %c0_22] : memref<1x128xf32, #tpu.memory_space<vmem>>, vector<1x128xf32>
    %29 = vector.broadcast %28 : vector<1x128xf32> to vector<16x128xf32>
    %30 = arith.addf %27, %29 : vector<16x128xf32>
    %cst_23 = arith.constant dense<0xFF800000> : vector<16xf32>
    %31 = vector.multi_reduction <maximumf>, %30, %cst_23 [1] : vector<16x128xf32> to vector<16xf32>
    %32 = vector.shape_cast %31 : vector<16xf32> to vector<16x1xf32>
    %33 = vector.broadcast %32 : vector<16x1xf32> to vector<16x128xf32>
    %34 = arith.subf %30, %33 : vector<16x128xf32>
    %35 = math.exp %34 : vector<16x128xf32>
    %cst_24 = arith.constant dense<0.000000e+00> : vector<16xf32>
    %36 = vector.multi_reduction <add>, %35, %cst_24 [1] : vector<16x128xf32> to vector<16xf32>
    %37 = vector.shape_cast %36 : vector<16xf32> to vector<16x1xf32>
    %38 = math.log %37 : vector<16x1xf32>
    %39 = vector.broadcast %38 : vector<16x1xf32> to vector<16x128xf32>
    %40 = arith.subf %34, %39 : vector<16x128xf32>
    %c0_25 = arith.constant 0 : index
    %c0_26 = arith.constant 0 : index
    %41 = vector.load %arg10[%c0_25, %c0_26] : memref<16x128xf32, #tpu.memory_space<vmem>>, vector<16x128xf32>
    tpu.vector_store %arg10[%c0_25, %c0_26], %40 {strides = array<i32>} : memref<16x128xf32, #tpu.memory_space<vmem>>, vector<16x128xf32>,
    return
  }
  func.func @transform_0(%arg0: i32) -> (i32, i32) {
    %c0_i32 = arith.constant 0 : i32
    %c0_i32_0 = arith.constant 0 : i32
    return %arg0, %c0_i32 : i32, i32
  }
  func.func @transform_1(%arg0: i32) -> (i32, i32) {
    %c0_i32 = arith.constant 0 : i32
    %c0_i32_0 = arith.constant 0 : i32
    %c0_i32_1 = arith.constant 0 : i32
    return %c0_i32, %c0_i32_0 : i32, i32
  }
  func.func @transform_2(%arg0: i32) -> (i32, i32) {
    %c0_i32 = arith.constant 0 : i32
    %c0_i32_0 = arith.constant 0 : i32
    %c0_i32_1 = arith.constant 0 : i32
    return %c0_i32, %c0_i32_0 : i32, i32
  }
  func.func @transform_3(%arg0: i32) -> (i32, i32) {
    %c0_i32 = arith.constant 0 : i32
    %c0_i32_0 = arith.constant 0 : i32
    %c0_i32_1 = arith.constant 0 : i32
    return %c0_i32, %c0_i32_0 : i32, i32
  }
  func.func @transform_4(%arg0: i32) -> (i32, i32) {
    %c0_i32 = arith.constant 0 : i32
    %c0_i32_0 = arith.constant 0 : i32
    %c0_i32_1 = arith.constant 0 : i32
    return %c0_i32, %c0_i32_0 : i32, i32
  }
  func.func @transform_5(%arg0: i32) -> (i32, i32) {
    %c0_i32 = arith.constant 0 : i32
    %c0_i32_0 = arith.constant 0 : i32
    %c0_i32_1 = arith.constant 0 : i32
    return %c0_i32, %c0_i32_0 : i32, i32
  }
  func.func @transform_6(%arg0: i32) -> (i32, i32) {
    %c0_i32 = arith.constant 0 : i32
    %c0_i32_0 = arith.constant 0 : i32
    %c0_i32_1 = arith.constant 0 : i32
    return %c0_i32, %c0_i32_0 : i32, i32
  }
  func.func @transform_7(%arg0: i32) -> (i32, i32) {
    %c0_i32 = arith.constant 0 : i32
    %c0_i32_0 = arith.constant 0 : i32
    %c0_i32_1 = arith.constant 0 : i32
    return %c0_i32, %c0_i32_0 : i32, i32
  }
  func.func @transform_8(%arg0: i32) -> (i32, i32) {
    %c0_i32 = arith.constant 0 : i32
    %c0_i32_0 = arith.constant 0 : i32
    %c0_i32_1 = arith.constant 0 : i32
    return %c0_i32, %c0_i32_0 : i32, i32
  }
  func.func @transform_9(%arg0: i32) -> (i32, i32) {
    %c0_i32 = arith.constant 0 : i32
    %c0_i32_0 = arith.constant 0 : i32
    return %arg0, %c0_i32 : i32, i32
  }
}

</mosaic_0001>

<bundles_post_ra>
// kernel: tpu_custom_call.1
= control target key start
LH: loop header
LB: loop body
LE: loop exit
PB: predicated region body
PF: predicated region fallthrough
CT: control target
= control target key end

     0   :  { %14 = vsyncpa [#allocation3], 0  ;;  %s1677_s0 = inlined_call_operand.hbm [shape: f32[16,784], index: 0, kind: input, shape index: {}]   ;;  %s1678_s1 = inlined_call_operand.hbm [shape: bf16[784,128], index: 1, kind: input, shape index: {}]   ;;  %s1679_s2 = inlined_call_operand.vmem [shape: f32[1,128], index: 2, kind: input, shape index: {}]   ;;  %s1680_s3 = inlined_call_operand.hbm [shape: bf16[128,128], index: 3, kind: input, shape index: {}]   ;;  %s1681_s4 = inlined_call_operand.vmem [shape: f32[1,128], index: 4, kind: input, shape index: {}]   ;;  %s1682_s5 = inlined_call_operand.hbm [shape: bf16[128,128], index: 5, kind: input, shape index: {}]   ;;  %s1683_s6 = inlined_call_operand.vmem [shape: f32[1,128], index: 6, kind: input, shape index: {}]   ;;  %s1684_s7 = inlined_call_operand.hbm [shape: bf16[128,128], index: 7, kind: input, shape index: {}]   ;;  %s1685_s8 = inlined_call_operand.vmem [shape: f32[1,128], index: 8, kind: input, shape index: {}]   ;;  %s1686_s9 = inlined_call_operand.hbm [shape: f32[16,128], index: 9, kind: output, shape index: {}]  }
   0x1   :  { %15 = vsyncpa [#allocation6], 0 }
   0x2   :  { %16 = vsyncpa [#allocation9], 0 }
   0x3   :  { %17 = vsyncpa [#allocation4], 0  ;;  %s1538_s30 = smov [#allocation5]  }
   0x4   :  { %s35_s10 = sshll.u32 %s1538_s30, 4  ;;  %s36_s10 = int_to_ptr.vmem [resolvable:$true] %s35_s10 }
   0x5   :  { %s1418_s11 = scalar_lea.vmem %s36_s10, 6272  ;;  %p1423_p1 = scmp.lt.s32.totalorder %s36_s10, %s36_s10 }
   0x6   :  { %p1419_p0 = scmp.ne.s32.totalorder %s36_s10, %s1418_s11  ;;  %p1424_p2 = scmp.lt.s32.totalorder %s1418_s11, %s1418_s11 }
   0x8   :  { %p1425_p3 = por %p1424_p2, %p1423_p1 }
   0xa   :  { %p1426_p4 = pnand %p1425_p3, %p1419_p0 }
   0xc   :  { %1429 = shalt.err (!%p1426_p4)
}
   0xd   :  { %s1539_s12 = smov 64   ;;  %s1540_s13 = smov 4  }
   0xe   :  { %41 = dma.hbm_to_vmem [thread:$0]  %s1678_s1, 6272, %s36_s10, [#allocation6], %s1539_s12, %s1539_s12, %s1540_s13  }
   0xf   :  { %s1541_s16 = smov [#allocation8]   ;;  %s1542_s18 = smov [#allocation2]  }
  0x10   :  { %s63_s17 = sshll.u32 %s1541_s16, 4  ;;  %s23_s19 = sshll.u32 %s1542_s18, 4  ;;  %s64_s17 = int_to_ptr.vmem [resolvable:$true] %s63_s17  ;;  %s24_s19 = int_to_ptr.vmem [resolvable:$true] %s23_s19 }
  0x11   :  { %s1438_s20 = scalar_lea.vmem %s64_s17, 1024  ;;  %p1443_p6 = scmp.lt.s32.totalorder %s64_s17, %s64_s17 }
  0x12   :  { %p1439_p5 = scmp.ne.s32.totalorder %s64_s17, %s1438_s20  ;;  %p1444_p7 = scmp.lt.s32.totalorder %s1438_s20, %s1438_s20 }
  0x14   :  { %p1445_p8 = por %p1444_p7, %p1443_p6 }
  0x16   :  { %p1446_p9 = pnand %p1445_p8, %p1439_p5 }
  0x18   :  { %1449 = shalt.err (!%p1446_p9)
}
  0x19   :  { %69 = dma.hbm_to_vmem [thread:$0]  %s1682_s5, 1024, %s64_s17, [#allocation9], %s1539_s12, %s1539_s12, %s1540_s13  }
  0x1a   :  { %s1458_s1 = scalar_lea.vmem %s24_s19, 1792  ;;  %p1463_p11 = scmp.lt.s32.totalorder %s24_s19, %s24_s19 }
  0x1b   :  { %p1459_p10 = scmp.ne.s32.totalorder %s24_s19, %s1458_s1  ;;  %p1464_p12 = scmp.lt.s32.totalorder %s1458_s1, %s1458_s1 }
  0x1d   :  { %p1465_p13 = por %p1464_p12, %p1463_p11 }
  0x1f   :  { %p1466_p0 = pnand %p1465_p13, %p1459_p10 }
  0x21   :  { %1469 = shalt.err (!%p1466_p0)
}
  0x22   :  { %s1543_s23 = smov 896   ;;  %s1544_s24 = smov 56  }
  0x23   :  { %29 = dma.hbm_to_vmem [thread:$0]  %s1677_s0, 1792, %s24_s19, [#allocation3], %s1543_s23, %s1543_s23, %s1544_s24  }
  0x24   :  { %s1545_s27 = smov [#allocation7]   ;;  %s1546_s29 = smov [#allocation10]  }
  0x25   :  { %s49_s28 = sshll.u32 %s1545_s27, 4  ;;  %s77_s30 = sshll.u32 %s1546_s29, 4  ;;  %s50_s28 = int_to_ptr.vmem [resolvable:$true] %s49_s28  ;;  %s78_s30 = int_to_ptr.vmem [resolvable:$true] %s77_s30 }
  0x26   :  { %s1478_s5 = scalar_lea.vmem %s50_s28, 1024  ;;  %p1483_p2 = scmp.lt.s32.totalorder %s50_s28, %s50_s28 }
  0x27   :  { %p1479_p1 = scmp.ne.s32.totalorder %s50_s28, %s1478_s5  ;;  %p1484_p3 = scmp.lt.s32.totalorder %s1478_s5, %s1478_s5 }
  0x29   :  { %p1485_p4 = por %p1484_p3, %p1483_p2 }
  0x2b   :  { %p1486_p5 = pnand %p1485_p4, %p1479_p1 }
  0x2d   :  { %1489 = shalt.err (!%p1486_p5)
}
  0x2e   :  { %55 = dma.hbm_to_vmem [thread:$0]  %s1680_s3, 1024, %s50_s28, [#allocation6], %s1539_s12, %s1539_s12, %s1540_s13  }
  0x2f   :  { %s1498_s0 = scalar_lea.vmem %s78_s30, 1024  ;;  %p1503_p7 = scmp.lt.s32.totalorder %s78_s30, %s78_s30 }
  0x30   :  { %p1499_p6 = scmp.ne.s32.totalorder %s78_s30, %s1498_s0  ;;  %p1504_p8 = scmp.lt.s32.totalorder %s1498_s0, %s1498_s0 }
  0x32   :  { %p1505_p9 = por %p1504_p8, %p1503_p7 }
  0x34   :  { %p1506_p10 = pnand %p1505_p9, %p1499_p6 }
  0x36   :  { %1509 = shalt.err (!%p1506_p10)
}
  0x37   :  { %83 = dma.hbm_to_vmem [thread:$0]  %s1684_s7, 1024, %s78_s30, [#allocation9], %s1539_s12, %s1539_s12, %s1540_s13  }
  0x38   :  { %1530 = dma.done.wait [#allocation3], 1792  }
  0x39   :  { %1531 = vsyncadd [#allocation3], 4294965504 }
  0x3a   :  { %1532 = dma.done.wait [#allocation6], 7296  }
  0x3b   :  { %1533 = vsyncadd [#allocation6], 4294960000 }
  0x3c   :  { %1534 = dma.done.wait [#allocation9], 2048  }
  0x3d   :  { %1535 = vsyncadd [#allocation9], 4294965248  ;;  %v1329_v0 = vld [vmem:[#allocation5 + $0x78] sm:$0xff]   ;;  %v1333_v4 = vld [vmem:[#allocation5 + $0x70] sm:$0xff]   ;;  %v1547_v43 = vmov 0.0   ;;  %vm1548_vm0 = vmmov 0  }
  0x3e   :  { %v1330_v1 = vld [vmem:[#allocation5 + $0x38] sm:$0xff]   ;;  %1154 = vmatprep.subr.bf16.mxu0 %v1329_v0  ;;  %v1334_v5 = vld [vmem:[#allocation5 + $0x30] sm:$0xff]   ;;  %v1337_v8 = vld [vmem:[#allocation5 + $0x68] sm:$0xff]   ;;  %vm522_vm1 = vcmask 130048  }
  0x3f   :  { %v1331_v2 = vld [vmem:[#allocation5 + $0xf8] sm:$0xff]   ;;  %1155 = vmatpush3.bf16.msra.mxu0 %v1330_v1  ;;  %v1335_v6 = vld [vmem:[#allocation5 + $0xf0] sm:$0xff]   ;;  %v1338_v9 = vld [vmem:[#allocation5 + $0x28] sm:$0xff]  }
  0x40   :  { %v1332_v3 = vld [vmem:[#allocation5 + $0xb8] sm:$0xff]   ;;  %1176 = vmatprep.subr.bf16.mxu1 %v1331_v2  ;;  %1156 = vmatprep.subr.bf16.mxu0 %v1333_v4  ;;  %v1336_v7 = vld [vmem:[#allocation5 + $0xb0] sm:$0xff]   ;;  %v1339_v10 = vld [vmem:[#allocation5 + $0xe8] sm:$0xff]  }
  0x41   :  { %1177 = vmatpush3.bf16.msra.mxu1 %v1332_v3  ;;  %v1340_v11 = vld [vmem:[#allocation5 + $0xa8] sm:$0xff]   ;;  %v1341_v12 = vld [vmem:[#allocation5 + $0x60] sm:$0xff]   ;;  %v1345_v16 = vld [vmem:[#allocation5 + $0x58] sm:$0xff]  }
  0x42   :  { %1178 = vmatprep.subr.bf16.mxu1 %v1335_v6  ;;  %v1342_v13 = vld [vmem:[#allocation5 + $0x20] sm:$0xff]   ;;  %v1346_v17 = vld [vmem:[#allocation5 + $0x18] sm:$0xff]   ;;  %v1349_v20 = vld [vmem:[#allocation5 + $0x50] sm:$0xff]  }
  0x43   :  { %1157 = vmatpush3.bf16.msra.mxu0 %v1334_v5  ;;  %v1343_v14 = vld [vmem:[#allocation5 + $0xe0] sm:$0xff]   ;;  %v1347_v18 = vld [vmem:[#allocation5 + $0xd8] sm:$0xff]   ;;  %v1350_v21 = vld [vmem:[#allocation5 + $0x10] sm:$0xff]  }
  0x44   :  { %1158 = vmatprep.subr.bf16.mxu0 %v1337_v8  ;;  %v1344_v15 = vld [vmem:[#allocation5 + $0xa0] sm:$0xff]   ;;  %v1348_v19 = vld [vmem:[#allocation5 + $0x98] sm:$0xff]   ;;  %v1351_v22 = vld [vmem:[#allocation5 + $0xd0] sm:$0xff]  }
  0x45   :  { %1179 = vmatpush3.bf16.msra.mxu1 %v1336_v7  ;;  %v1352_v23 = vld [vmem:[#allocation5 + $0x90] sm:$0xff]   ;;  %v1353_v24 = vld [vmem:[#allocation5 + $0x48] sm:$0xff]   ;;  %v1357_v28 = vld [vmem:[#allocation5 + $0x40] sm:$0xff]  }
  0x46   :  { %1180 = vmatprep.subr.bf16.mxu1 %v1339_v10  ;;  %v1354_v25 = vld [vmem:[#allocation5 + $0x8] sm:$0xff]   ;;  %v1358_v29 = vld [vmem:[#allocation5] sm:$0xff]   ;;  %v103_v31 = vld [vmem:[#allocation2 + $0x8] sm:$0xff] }
  0x47   :  { %1159 = vmatpush3.bf16.msra.mxu0 %v1338_v9  ;;  %v1355_v26 = vld [vmem:[#allocation5 + $0xc8] sm:$0xff]   ;;  %v1359_v30 = vld [vmem:[#allocation5 + $0xc0] sm:$0xff]   ;;  %v110_v32 = vld [vmem:[#allocation2 + $0x40] sm:$0xff] }
  0x48   :  { %1160 = vmatprep.subr.bf16.mxu0 %v1341_v12  ;;  %v1356_v27 = vld [vmem:[#allocation5 + $0x88] sm:$0xff]   ;;  %v117_v33 = vpack.c.bf16 %v110_v32, %v103_v31  ;;  %v1360_v34 = vld [vmem:[#allocation5 + $0x80] sm:$0xff]   ;;  %v102_v35 = vld [vmem:[#allocation2] sm:$0xff] }
  0x49   :  { %1181 = vmatpush3.bf16.msra.mxu1 %v1340_v11  ;;  %v109_v36 = vld [vmem:[#allocation2 + $0x38] sm:$0xff]  ;;  %v1361_v38 = vld [vmem:[#allocation5 + $0x178] sm:$0xff]   ;;  %v112_v40 = vld [vmem:[#allocation2 + $0x50] sm:$0xff] }
  0x4a   :  { %1182 = vmatprep.subr.bf16.mxu1 %v1343_v14  ;;  %558 = vmatprep.mubr.bf16.mxu0 %v117_v33  ;;  %v116_v37 = vpack.c.bf16 %v109_v36, %v102_v35  ;;  %v105_v39 = vld [vmem:[#allocation2 + $0x18] sm:$0xff]  ;;  %v1362_v42 = vld [vmem:[#allocation5 + $0x138] sm:$0xff]   ;;  %v104_v44 = vld [vmem:[#allocation2 + $0x10] sm:$0xff] }
  0x4b   :  { %1161 = vmatpush3.bf16.msra.mxu0 %v1342_v13  ;;  %v119_v41 = vpack.c.bf16 %v112_v40, %v105_v39  ;;  %v111_v45 = vld [vmem:[#allocation2 + $0x48] sm:$0xff]  ;;  %v1363_v47 = vld [vmem:[#allocation5 + $0x170] sm:$0xff]   ;;  %v1365_v49 = vld [vmem:[#allocation5 + $0x168] sm:$0xff]  }
  0x4c   :  { %1162 = vmatprep.subr.bf16.mxu0 %v1345_v16  ;;  %v118_v46 = vpack.c.bf16 %v111_v45, %v104_v44  ;;  %v1364_v48 = vld [vmem:[#allocation5 + $0x130] sm:$0xff]   ;;  %v1366_v50 = vld [vmem:[#allocation5 + $0x128] sm:$0xff]   ;;  %v1367_v51 = vld [vmem:[#allocation5 + $0x160] sm:$0xff]  }
  0x4d   :  { %1183 = vmatpush3.bf16.msra.mxu1 %v1344_v15  ;;  %599 = vmatprep.mubr.bf16.mxu1 %v119_v41  ;;  %v1368_v52 = vld [vmem:[#allocation5 + $0x120] sm:$0xff]   ;;  %v1369_v53 = vld [vmem:[#allocation5 + $0x158] sm:$0xff]   ;;  %v1371_v55 = vld [vmem:[#allocation5 + $0x150] sm:$0xff]  }
  0x4e   :  { %1184 = vmatprep.subr.bf16.mxu1 %v1347_v18  ;;  %v1370_v54 = vld [vmem:[#allocation5 + $0x118] sm:$0xff]   ;;  %v1377_v56 = vld [vmem:[#allocation5 + $0x180] sm:$0xff]   ;;  %v1372_v58 = vld [vmem:[#allocation5 + $0x110] sm:$0xff]  }
  0x4f   :  { %1163 = vmatpush3.bf16.msra.mxu0 %v1346_v17  ;;  %v107_v57 = vld [vmem:[#allocation2 + $0x28] sm:$0xff]  ;;  %v1373_v59 = vld [vmem:[#allocation5 + $0x148] sm:$0xff]   ;;  %v114_v60 = vld [vmem:[#allocation2 + $0x60] sm:$0xff] }
  0x50   :  { %1164 = vmatprep.subr.bf16.mxu0 %v1349_v20  ;;  %v121_v61 = vpack.c.bf16 %v114_v60, %v107_v57  ;;  %v108_v62 = vld [vmem:[#allocation2 + $0x30] sm:$0xff]  ;;  %v115_v63 = vld [vmem:[#allocation2 + $0x68] sm:$0xff]  ;;  %v1374_v1 = vld [vmem:[#allocation5 + $0x108] sm:$0xff]  }
  0x51   :  { %1185 = vmatpush3.bf16.msra.mxu1 %v1348_v19  ;;  %v122_v0 = vpack.c.bf16 %v115_v63, %v108_v62  ;;  %v1375_v2 = vld [vmem:[#allocation5 + $0x140] sm:$0xff]   ;;  %v106_v4 = vld [vmem:[#allocation2 + $0x20] sm:$0xff]  ;;  %v113_v5 = vld [vmem:[#allocation2 + $0x58] sm:$0xff] }
  0x52   :  { %1186 = vmatprep.subr.bf16.mxu1 %v1351_v22  ;;  %v1376_v3 = vld [vmem:[#allocation5 + $0x100] sm:$0xff]   ;;  %v120_v6 = vpack.c.bf16 %v113_v5, %v106_v4  ;;  %v1379_v8 = vld [vmem:[#allocation7 + $0x30] sm:$0xff]   ;;  %v1380_v9 = vld [vmem:[#allocation7 + $0x28] sm:$0xff]  }
  0x53   :  { %1165 = vmatpush3.bf16.msra.mxu0 %v1350_v21  ;;  %v1378_v7 = vld [vmem:[#allocation7 + $0x38] sm:$0xff]   ;;  %v1381_v10 = vld [vmem:[#allocation7 + $0x20] sm:$0xff]   ;;  %v1383_v12 = vld [vmem:[#allocation7 + $0x10] sm:$0xff]  }
  0x54   :  { %1166 = vmatprep.subr.bf16.mxu0 %v1353_v24  ;;  %v1382_v11 = vld [vmem:[#allocation7 + $0x18] sm:$0xff]   ;;  %v1384_v13 = vld [vmem:[#allocation7 + $0x8] sm:$0xff]   ;;  %v1385_v14 = vld [vmem:[#allocation7] sm:$0xff]  }
  0x55   :  { %1187 = vmatpush3.bf16.msra.mxu1 %v1352_v23  ;;  %v1386_v15 = vld [vmem:[#allocation8 + $0x38] sm:$0xff]   ;;  %v1387_v16 = vld [vmem:[#allocation8 + $0x30] sm:$0xff]   ;;  %v1388_v17 = vld [vmem:[#allocation8 + $0x28] sm:$0xff]  }
  0x56   :  { %1188 = vmatprep.subr.bf16.mxu1 %v1355_v26  ;;  %v1389_v18 = vld [vmem:[#allocation8 + $0x20] sm:$0xff]   ;;  %v1390_v19 = vld [vmem:[#allocation8 + $0x18] sm:$0xff]   ;;  %v1076_v32 = vld [vmem:[%s1679_s2] ss:$0 sm:$0xff] }
  0x57   :  { %1167 = vmatpush3.bf16.msra.mxu0 %v1354_v25  ;;  %v1393_v57 = vld [vmem:[#allocation8] sm:$0xff]   ;;  %v1396_v60 = vld [vmem:[#allocation10 + $0x28] sm:$0xff]   ;;  %v1398_v62 = vld [vmem:[#allocation10 + $0x18] sm:$0xff]  }
  0x58   :  { %1168 = vmatprep.subr.bf16.mxu0 %v1357_v28  ;;  %v1127_v63 = vld [vmem:[%s1681_s4] ss:$0 sm:$0xff] }
  0x59   :  { %1189 = vmatpush3.bf16.msra.mxu1 %v1356_v27 }
  0x5a   :  { %1190 = vmatprep.subr.bf16.mxu1 %v1359_v30 }
  0x5b   :  { %1169 = vmatpush3.bf16.msra.mxu0 %v1358_v29 }
  0x5c   :  { %1198 = vmatprep.subr.bf16.mxu0 %v1361_v38 }
  0x5d   :  { %1191 = vmatpush3.bf16.msra.mxu1 %v1360_v34 }
  0x5e   :  { %1249 = vmatprep.subr.bf16.mxu1 %v1547_v43  ;;  %559 = vmatmul.mubr.bf16.vlgmr.msra.gmra.mxu0 %v116_v37 }
  0x5f   :  { %1199 = vmatpush3.bf16.msra.mxu0 %v1362_v42  ;;  %640 = vmatprep.mubr.bf16.mxu0 %v121_v61  ;;  %v1397_v61 = vld [vmem:[#allocation10 + $0x20] sm:$0xff]  }
  0x60   :  { %600 = vmatmul.mubr.bf16.vlgmr.msra.gmra.mxu1 %v118_v46  ;;  %1200 = vmatprep.subr.bf16.mxu0 %v1363_v47 }
  0x61   :  { %1251 = vmatprep.mubr.msk.bf16.mxu1 %vm1548_vm0, %v1547_v43  ;;  %1250 = vmatpush3.bf16.msra.mxu1 %v1377_v56  ;;  %v1392_v56 = vld [vmem:[#allocation8 + $0x8] sm:$0xff]  }
  0x62   :  { %1255 = vmatprep.subr.bf16.mxu1 %v1547_v43 }
  0x63   :  { %1201 = vmatpush3.bf16.msra.mxu0 %v1364_v48 }
  0x64   :  { %1202 = vmatprep.subr.bf16.mxu0 %v1365_v49 }
  0x67   :  { %1203 = vmatpush3.bf16.msra.mxu0 %v1366_v50 }
  0x68   :  { %1204 = vmatprep.subr.bf16.mxu0 %v1367_v51  ;;  %1252 = vmatmul.mubr.msk.bf16.vlgmr.msra.gmra.mxu1 %vm522_vm1, %v122_v0 }
  0x69   :  { %1271 = vmatprep.mubr.msk.bf16.mxu1 %vm1548_vm0, %v1547_v43  ;;  %1256 = vmatpush3.bf16.msra.mxu1 %v1378_v7 }
  0x6a   :  { %1257 = vmatprep.subr.bf16.mxu1 %v1547_v43 }
  0x6b   :  { %1205 = vmatpush3.bf16.msra.mxu0 %v1368_v52 }
  0x6c   :  { %1206 = vmatprep.subr.bf16.mxu0 %v1369_v53 }
  0x6d   :  { %1258 = vmatpush3.bf16.msra.mxu1 %v1379_v8 }
  0x6e   :  { %1259 = vmatprep.subr.bf16.mxu1 %v1547_v43 }
  0x6f   :  { %1207 = vmatpush3.bf16.msra.mxu0 %v1370_v54 }
  0x70   :  { %1208 = vmatprep.subr.bf16.mxu0 %v1371_v55  ;;  %v1391_v55 = vld [vmem:[#allocation8 + $0x10] sm:$0xff]  }
  0x71   :  { %1260 = vmatpush3.bf16.msra.mxu1 %v1380_v9  ;;  %v1399_v9 = vld [vmem:[#allocation10 + $0x10] sm:$0xff]  }
  0x72   :  { %1261 = vmatprep.subr.bf16.mxu1 %v1547_v43 }
  0x73   :  { %1209 = vmatpush3.bf16.msra.mxu0 %v1372_v58  ;;  %v1394_v58 = vld [vmem:[#allocation10 + $0x38] sm:$0xff]  }
  0x74   :  { %1210 = vmatprep.subr.bf16.mxu0 %v1373_v59  ;;  %v1395_v59 = vld [vmem:[#allocation10 + $0x30] sm:$0xff]  }
  0x75   :  { %1262 = vmatpush3.bf16.msra.mxu1 %v1381_v10  ;;  %v1400_v10 = vld [vmem:[#allocation10 + $0x8] sm:$0xff]  }
  0x76   :  { %1263 = vmatprep.subr.bf16.mxu1 %v1547_v43 }
  0x77   :  { %1211 = vmatpush3.bf16.msra.mxu0 %v1374_v1 }
  0x78   :  { %1212 = vmatprep.subr.bf16.mxu0 %v1375_v2 }
  0x79   :  { %1264 = vmatpush3.bf16.msra.mxu1 %v1382_v11  ;;  %v1401_v11 = vld [vmem:[#allocation10] sm:$0xff]  }
  0x7a   :  { %1265 = vmatprep.subr.bf16.mxu1 %v1547_v43 }
  0x7b   :  { %1213 = vmatpush3.bf16.msra.mxu0 %v1376_v3 }
  0x7c   :  { %1275 = vmatprep.subr.bf16.mxu0 %v1547_v43 }
  0x7d   :  { %1266 = vmatpush3.bf16.msra.mxu1 %v1383_v12  ;;  %v1136_v12 = vld [vmem:[%s1683_s6] ss:$0 sm:$0xff]  ;;  %s1549_s6 = smov [#allocation11]  }
  0x7e   :  { %641 = vmatmul.mubr.bf16.vlgmr.msra.gmra.mxu0 %v120_v6  ;;  %1267 = vmatprep.subr.bf16.mxu1 %v1547_v43 }
  0x7f   :  { %1291 = vmatprep.mubr.msk.bf16.mxu0 %vm1548_vm0, %v1547_v43  ;;  %1276 = vmatpush3.bf16.msra.mxu0 %v1386_v15 }
  0x80   :  { %1277 = vmatprep.subr.bf16.mxu0 %v1547_v43 }
  0x81   :  { %1268 = vmatpush3.bf16.msra.mxu1 %v1384_v13 }
  0x82   :  { %1269 = vmatprep.subr.bf16.mxu1 %v1547_v43 }
  0x83   :  { %1278 = vmatpush3.bf16.msra.mxu0 %v1387_v16 }
  0x84   :  { %1279 = vmatprep.subr.bf16.mxu0 %v1547_v43 }
  0x85   :  { %1270 = vmatpush3.bf16.msra.mxu1 %v1385_v14 }
  0x86   :  { %1295 = vmatprep.subr.bf16.mxu1 %v1547_v43 }
  0x87   :  { %1280 = vmatpush3.bf16.msra.mxu0 %v1388_v17 }
  0x88   :  { %1281 = vmatprep.subr.bf16.mxu0 %v1547_v43 }
  0x8b   :  { %1282 = vmatpush3.bf16.msra.mxu0 %v1389_v18 }
  0x8c   :  { %1283 = vmatprep.subr.bf16.mxu0 %v1547_v43 }
  0x8f   :  { %1284 = vmatpush3.bf16.msra.mxu0 %v1390_v19 }
  0x90   :  { %1285 = vmatprep.subr.bf16.mxu0 %v1547_v43 }
  0x93   :  { %1286 = vmatpush3.bf16.msra.mxu0 %v1391_v55 }
  0x94   :  { %1287 = vmatprep.subr.bf16.mxu0 %v1547_v43 }
  0x97   :  { %1288 = vmatpush3.bf16.msra.mxu0 %v1392_v56 }
  0x98   :  { %1289 = vmatprep.subr.bf16.mxu0 %v1547_v43 }
  0x9b   :  { %1290 = vmatpush3.bf16.msra.mxu0 %v1393_v57 }
 0x11e   :  { %v1170_v23 = vpop.f32.mrf.mxu0 }
 0x120   :  { %v1192_v20 = vpop.f32.mrf.mxu1  ;;  %v1171_v25 = vpop.f32.mrf.mxu0 }
 0x121   :  { %v1172_v31 = vadd.f32 %v1171_v25, %v1170_v23 }
 0x122   :  { %v1193_v21 = vpop.f32.mrf.mxu1  ;;  %v1173_v28 = vpop.f32.mrf.mxu0 }
 0x123   :  { %v561_v34 = vadd.f32 %v1172_v31, %v1076_v32  ;;  %v1194_v35 = vadd.f32 %v1193_v21, %v1192_v20 }
 0x124   :  { %v1195_v22 = vpop.f32.mrf.mxu1  ;;  %v1174_v33 = vpop.f32.mrf.mxu0 }
 0x125   :  { %v1175_v36 = vadd.f32 %v1174_v33, %v1173_v28  ;;  %v602_v39 = vadd.f32 %v1194_v35, %v561_v34 }
 0x126   :  { %v1196_v24 = vpop.f32.mrf.mxu1 }
 0x127   :  { %v564_v40 = vadd.f32 %v1175_v36, %v1076_v32  ;;  %v1197_v41 = vadd.f32 %v1196_v24, %v1195_v22 }
 0x128   :  { %v683_v26 = vpop.f32.mrf.mxu1 }
 0x129   :  { %v605_v47 = vadd.f32 %v1197_v41, %v564_v40 }
 0x12a   :  { %v1253_v27 = vpop.f32.mrf.mxu1 }
 0x12c   :  { %v686_v29 = vpop.f32.mrf.mxu1 }
 0x12e   :  { %v1254_v30 = vpop.f32.mrf.mxu1 }
 0x13e   :  { %v1214_v37 = vpop.f32.mrf.mxu0 }
 0x140   :  { %v1215_v38 = vpop.f32.mrf.mxu0 }
 0x141   :  { %v1216_v42 = vadd.f32 %v1215_v38, %v1214_v37 }
 0x142   :  { %v1217_v44 = vpop.f32.mrf.mxu0 }
 0x143   :  { %v643_v45 = vadd.f32 %v1216_v42, %v602_v39 }
 0x144   :  { %v1218_v46 = vpop.f32.mrf.mxu0 }
 0x145   :  { %v1219_v48 = vadd.f32 %v1218_v46, %v1217_v44  ;;  %v684_v49 = vadd.f32 %v683_v26, %v643_v45 }
 0x147   :  { %v646_v50 = vadd.f32 %v1219_v48, %v605_v47  ;;  %v690_v52 = vmax.f32 %v684_v49, 0.0 }
 0x149   :  { %v687_v51 = vadd.f32 %v686_v29, %v646_v50 }
 0x14b   :  { %v691_v53 = vmax.f32 %v687_v51, 0.0 }
 0x14d   :  { %v692_v54 = vpack.c.bf16 %v691_v53, %v690_v52 }
 0x14f   :  { %1272 = vmatmul.mubr.bf16.vlgmr.msra.gmra.mxu1 %v692_v54 }
 0x150   :  { %1311 = vmatprep.mubr.msk.bf16.mxu1 %vm1548_vm0, %v1547_v43  ;;  %1296 = vmatpush3.bf16.msra.mxu1 %v1394_v58 }
 0x151   :  { %1297 = vmatprep.subr.bf16.mxu1 %v1547_v43 }
 0x154   :  { %1298 = vmatpush3.bf16.msra.mxu1 %v1395_v59 }
 0x155   :  { %1299 = vmatprep.subr.bf16.mxu1 %v1547_v43 }
 0x158   :  { %1300 = vmatpush3.bf16.msra.mxu1 %v1396_v60 }
 0x159   :  { %1301 = vmatprep.subr.bf16.mxu1 %v1547_v43 }
 0x15c   :  { %1302 = vmatpush3.bf16.msra.mxu1 %v1397_v61 }
 0x15d   :  { %1303 = vmatprep.subr.bf16.mxu1 %v1547_v43 }
 0x160   :  { %1304 = vmatpush3.bf16.msra.mxu1 %v1398_v62 }
 0x161   :  { %1305 = vmatprep.subr.bf16.mxu1 %v1547_v43 }
 0x164   :  { %1306 = vmatpush3.bf16.msra.mxu1 %v1399_v9 }
 0x165   :  { %1307 = vmatprep.subr.bf16.mxu1 %v1547_v43 }
 0x168   :  { %1308 = vmatpush3.bf16.msra.mxu1 %v1400_v10 }
 0x169   :  { %1309 = vmatprep.subr.bf16.mxu1 %v1547_v43  ;;  %v1145_v43 = vld [vmem:[%s1685_s8] ss:$0 sm:$0xff]  ;;  %s1062_s8 = sshll.u32 %s1549_s6, 4  ;;  %s1063_s8 = int_to_ptr.vmem [resolvable:$true] %s1062_s8 }
 0x16a   :  { %s1510_s18 = scalar_lea.vmem %s1063_s8, 256  ;;  %p1515_p12 = scmp.lt.s32.totalorder %s1063_s8, %s1063_s8 }
 0x16b   :  { %p1511_p11 = scmp.ne.s32.totalorder %s1063_s8, %s1510_s18  ;;  %p1516_p13 = scmp.lt.s32.totalorder %s1510_s18, %s1510_s18 }
 0x16c   :  { %1310 = vmatpush3.bf16.msra.mxu1 %v1401_v11 }
 0x16d   :  { %p1517_p0 = por %p1516_p13, %p1515_p12 }
 0x16f   :  { %p1518_p1 = pnand %p1517_p0, %p1511_p11 }
 0x20f   :  { %v798_v0 = vpop.f32.mrf.mxu1 }
 0x210   :  { %v799_v2 = vadd.f32 %v1127_v63, %v798_v0 }
 0x211   :  { %v1273_v1 = vpop.f32.mrf.mxu1 }
 0x212   :  { %v805_v6 = vmax.f32 %v799_v2, 0.0 }
 0x213   :  { %v801_v3 = vpop.f32.mrf.mxu1 }
 0x214   :  { %v802_v4 = vadd.f32 %v1127_v63, %v801_v3 }
 0x215   :  { %v1274_v5 = vpop.f32.mrf.mxu1 }
 0x216   :  { %v806_v7 = vmax.f32 %v802_v4, 0.0 }
 0x218   :  { %v807_v8 = vpack.c.bf16 %v806_v7, %v805_v6 }
 0x21a   :  { %1292 = vmatmul.mubr.bf16.vlgmr.msra.gmra.mxu0 %v807_v8 }
 0x2da   :  { %v913_v13 = vpop.f32.mrf.mxu0 }
 0x2db   :  { %v914_v15 = vadd.f32 %v1136_v12, %v913_v13 }
 0x2dc   :  { %v1293_v14 = vpop.f32.mrf.mxu0 }
 0x2dd   :  { %v920_v19 = vmax.f32 %v914_v15, 0.0 }
 0x2de   :  { %v916_v16 = vpop.f32.mrf.mxu0 }
 0x2df   :  { %v917_v17 = vadd.f32 %v1136_v12, %v916_v16 }
 0x2e0   :  { %v1294_v18 = vpop.f32.mrf.mxu0 }
 0x2e1   :  { %v921_v20 = vmax.f32 %v917_v17, 0.0 }
 0x2e3   :  { %v922_v21 = vpack.c.bf16 %v921_v20, %v920_v19 }
 0x2e5   :  { %1312 = vmatmul.mubr.bf16.vlgmr.msra.gmra.mxu1 %v922_v21 }
 0x3a5   :  { %v1028_v22 = vpop.f32.mrf.mxu1 }
 0x3a6   :  { %v1029_v23 = vadd.f32 %v1145_v43, %v1028_v22 }
 0x3a7   :  { %v1313_v24 = vpop.f32.mrf.mxu1 }
 0x3a8   :  { %1035 = vmax.xlane.f32.xlu0 %v1029_v23 }
 0x3a9   :  { %v1031_v25 = vpop.f32.mrf.mxu1 }
 0x3aa   :  { %v1032_v26 = vadd.f32 %v1145_v43, %v1031_v25 }
 0x3ab   :  { %v1314_v27 = vpop.f32.mrf.mxu1 }
 0x3ac   :  { %1037 = vmax.xlane.f32.xlu0 %v1032_v26 }
 0x431   :  { %v1036_v28 = vpop.xlane.xlu0 %1035 }
 0x432   :  { %v1039_v29 = vsub.f32 %v1029_v23, %v1036_v28 }
 0x434   :  { %v1041_v30 = vmul.f32 1.442695, %v1039_v29 }
 0x435   :  { %v1038_v31 = vpop.xlane.xlu0 %1037 }
 0x436   :  { %v1040_v32 = vsub.f32 %v1032_v26, %v1038_v31  ;;  %1402 = vpow2.f32 %v1041_v30 }
 0x438   :  { %v1043_v33 = vmul.f32 1.442695, %v1040_v32 }
 0x43a   :  { %1404 = vpow2.f32 %v1043_v33 }
 0x443   :  { %v1403_v34 = vpop.eup %1402 }
 0x444   :  { %1045 = vadd.xlane.f32.xlu1 %v1403_v34 }
 0x447   :  { %v1405_v35 = vpop.eup %1404 }
 0x448   :  { %1047 = vadd.xlane.f32.xlu1 %v1405_v35 }
 0x4cd   :  { %v1046_v36 = vpop.xlane.xlu1 %1045 }
 0x4ce   :  { %1406 = vlog2.f32 %v1046_v36 }
 0x4d1   :  { %v1048_v37 = vpop.xlane.xlu1 %1047 }
 0x4d2   :  { %1408 = vlog2.f32 %v1048_v37 }
 0x4db   :  { %v1407_v38 = vpop.eup %1406 }
 0x4dc   :  { %v1050_v39 = vmul.f32 0.6931472, %v1407_v38 }
 0x4de   :  { %v1053_v40 = vsub.f32 %v1039_v29, %v1050_v39 }
 0x4df   :  { %v1409_v41 = vpop.eup %1408 }
 0x4e0   :  { %1055 = vst [vmem:[#allocation11] sm:$0xff] %v1053_v40  ;;  %v1052_v42 = vmul.f32 0.6931472, %v1409_v41 }
 0x4e2   :  { %v1054_v44 = vsub.f32 %v1040_v32, %v1052_v42 }
 0x4e4   :  { %1056 = vst [vmem:[#allocation11 + $0x8] sm:$0xff] %v1054_v44 }
 0x4e5   :  { %1521 = shalt.err (!%p1518_p1)
}
 0x4e6   :  { %s1550_s19 = smov 128   ;;  %s1551_s20 = smov 8  }
 0x4e7   :  { %1068 = dma.vmem_to_hbm [thread:$0]  %s1063_s8, 256, %s1686_s9, [#allocation4], %s1550_s19, %s1550_s19, %s1551_s20  }
 0x4e8   :  { %1536 = dma.done.wait [#allocation4], 256  }
 0x4e9   :  { %1537 = vsyncadd [#allocation4], 4294967040 }
 0x4ea   :  { %1072 = vsyncpa [#allocation3], 1 }
 0x4eb   :  { %1073 = vsyncpa [#allocation6], 1 }
 0x4ec   :  { %1074 = vsyncpa [#allocation9], 1 }
 0x4ed   :  { %1075 = vsyncpa [#allocation4], 1 }

</bundles_post_ra>
